<compile_context>
chip_gen: v7x
topology: tpu7x:2x2x1
jax: 0.10.0
libtpu: 0.0.40
codegen_flags: <defaults>
</compile_context>

<pallas_src>
import math
import functools

import jax
import jax.numpy as jnp
from jax.experimental import pallas as pl
from jax.experimental.pallas import tpu as pltpu


def _compiler_params():
    cls = getattr(pltpu, "CompilerParams", None)
    if cls is None:
        return None
    return cls(dimension_semantics=("parallel",),
               vmem_limit_bytes=32 * 1024 * 1024)


# ---------------------------------------------------------------------------
# Kernel: QPSK map (systematic bits) + AWGN + exact-LLR hard decision
# ---------------------------------------------------------------------------
def _awgn_kernel(bits_ref, noise_ref, hat_ref, *, thr):
    # Inputs arrive bf16 to halve HBM traffic; compute in f32 (v5e has no
    # bf16 VPU; casts are cheap VPU ops).
    b = bits_ref[...].astype(jnp.float32)
    n = noise_ref[...].astype(jnp.float32)
    # Folded channel + demapper:
    #   y = (1-2b)/sqrt(2) + sqrt(no/2)*n  and  llr = -2*sqrt(2)*y/no,
    # so (llr > 0) == (y < 0) == ((1-2b) + sqrt(no)*n < 0) with thr = sqrt(no).
    y_scaled = (1.0 - 2.0 * b) + thr * n
    hat_ref[...] = (y_scaled < 0.0).astype(hat_ref.dtype)


# ---------------------------------------------------------------------------
# Wrapper
# ---------------------------------------------------------------------------
class SystemAWGNModelPallas:
    """Pallas/TPU port of System_AWGN_model.forward (cw_estimates=False)."""

    def __init__(self, n, k, batch_tile=2048):
        assert n % 2 == 0, "QPSK needs an even codeword length"
        self.n = int(n)
        self.k = int(k)
        self.n_bits_per_sym = 2
        self.coderate = self.k / self.n
        self.batch_tile = int(batch_tile)
        # TODO(synk): real SC polar encoder/decoder not expressed; the
        # systematic-code + hard-decision stand-in makes the encoder a no-op
        # on the returned bits (dead matmul removed per perf review).

    # ---- tiling -----------------------------------------------------------
    def _pick_batch_tile(self, batch_size):
        tb = min(self.batch_tile, batch_size)
        # Keep >= 2 grid steps when possible: both v7x TensorCores get work
        # under the "parallel" axis and the double-buffered pipeline overlaps.
        if batch_size >= 16:
            half = max(8, ((batch_size // 2) // 8) * 8)
            tb = min(tb, half)
        if batch_size >= 8:
            tb = max(8, (tb // 8) * 8)

        # Per-step VMEM: double-buffered bf16 inputs (bits + noise) and
        # double-buffered f32 output.  Conservative budget fits every chip
        # generation (v7x: 64 MiB physical / 32 MiB scoped).
        def per_step_bytes(t):
            return 2 * (2 * t * self.k * 2) + 2 * (t * self.k * 4)

        budget = 24 * 1024 * 1024
        while tb > 8 and per_step_bytes(tb) > budget:
            tb = max(8, ((tb // 2) // 8) * 8)
        return max(1, min(tb, batch_size))

    # ---- forward ----------------------------------------------------------
    def __call__(self, batch_size, ebno_db, key):
        k = self.k

        # ebnodb2no (Sionna convention); thr = sqrt(no) folded on the host and
        # baked into the kernel as a compile-time constant (ebno_db is Python).
        ebno_lin = 10.0 ** (float(ebno_db) / 10.0)
        no = 1.0 / (ebno_lin * self.coderate * self.n_bits_per_sym)
        thr = math.sqrt(no)

        # Host-side randomness (portable: no TPU-only PRNG primitives).
        kb, kn = jax.random.split(key)
        bits_bool = jax.random.bernoulli(kb, 0.5, (batch_size, k))
        bits = bits_bool.astype(jnp.float32)                       # returned
        bits_bf = bits_bool.astype(jnp.bfloat16)                   # kernel in
        noise_bf = jax.random.normal(kn, (batch_size, k), jnp.bfloat16)

        tb = self._pick_batch_tile(batch_size)
        grid = (pl.cdiv(batch_size, tb),)
        bk_spec = pl.BlockSpec((tb, k), lambda i: (i, 0))

        kwargs = {}
        cp = _compiler_params()
        if cp is not None:
            kwargs["compiler_params"] = cp

        bits_hat = pl.pallas_call(
            functools.partial(_awgn_kernel, thr=thr),
            grid=grid,
            in_specs=[bk_spec, bk_spec],
            out_specs=bk_spec,
            out_shape=jax.ShapeDtypeStruct((batch_size, k), jnp.float32),
            **kwargs,
        )(bits_bf, noise_bf)
        return bits, bits_hat


if __name__ == "__main__":
    n, k = 256, 128            # rate-1/2 code; K = 128 -> lane-dense output
    batch_size = 256           # clamped to 2 batch tiles of 128 -> 2-step grid
    ebno_db = 4.0

    model = SystemAWGNModelPallas(n=n, k=k)
    key = jax.random.PRNGKey(0)
    bits, bits_hat = model(batch_size, ebno_db, key)
    jax.block_until_ready((bits, bits_hat))

    assert bits.shape == (batch_size, k) and bits_hat.shape == (batch_size, k)
    assert bits.dtype == jnp.float32 and bits_hat.dtype == jnp.float32
    assert bool(jnp.all((bits == 0.0) | (bits == 1.0)))
    assert bool(jnp.all((bits_hat == 0.0) | (bits_hat == 1.0)))
    # Uncoded-QPSK sanity: at Eb/No = 4 dB the raw BER is ~5.6%.
    ber = float(jnp.mean(jnp.abs(bits - bits_hat)))
    assert ber < 0.2, f"unexpected BER {ber}"
    print("KERNEL_OK")
</pallas_src>

<mosaic_0001>
module attributes {stable_mosaic.version = 11 : i64} {
  func.func @_awgn_kernel(%arg0: i32, %arg1: memref<128x128xbf16, #tpu.memory_space<vmem>>, %arg2: memref<128x128xbf16, #tpu.memory_space<vmem>>, %arg3: memref<128x128xf32, #tpu.memory_space<vmem>>) attributes {dimension_semantics = [#tpu.dimension_semantics<parallel>], iteration_bounds = array<i64: 2>, scalar_prefetch = 0 : i64, scratch_operands = 0 : i64, tpu.core_type = #tpu.core_type<tc>, window_params = [{transform_indices = @transform_0, window_bounds = array<i64: 128, 128>}, {transform_indices = @transform_1, window_bounds = array<i64: 128, 128>}, {transform_indices = @transform_2, window_bounds = array<i64: 128, 128>}]} {
    %c0 = arith.constant 0 : index
    %c0_0 = arith.constant 0 : index
    %0 = vector.load %arg1[%c0, %c0_0] : memref<128x128xbf16, #tpu.memory_space<vmem>>, vector<128x128xbf16>
    %1 = arith.extf %0 : vector<128x128xbf16> to vector<128x128xf32>
    %c0_1 = arith.constant 0 : index
    %c0_2 = arith.constant 0 : index
    %2 = vector.load %arg2[%c0_1, %c0_2] : memref<128x128xbf16, #tpu.memory_space<vmem>>, vector<128x128xbf16>
    %3 = arith.extf %2 : vector<128x128xbf16> to vector<128x128xf32>
    %cst = arith.constant 2.000000e+00 : f32
    %4 = vector.broadcast %cst : f32 to vector<128x128xf32>
    %5 = arith.mulf %4, %1 : vector<128x128xf32>
    %cst_3 = arith.constant 1.000000e+00 : f32
    %6 = vector.broadcast %cst_3 : f32 to vector<128x128xf32>
    %7 = arith.subf %6, %5 : vector<128x128xf32>
    %cst_4 = arith.constant 0.630957365 : f32
    %8 = vector.broadcast %cst_4 : f32 to vector<128x128xf32>
    %9 = arith.mulf %8, %3 : vector<128x128xf32>
    %10 = arith.addf %7, %9 : vector<128x128xf32>
    %cst_5 = arith.constant 0.000000e+00 : f32
    %11 = vector.broadcast %cst_5 : f32 to vector<128x128xf32>
    %12 = arith.cmpf olt, %10, %11 : vector<128x128xf32>
    %13 = arith.extui %12 : vector<128x128xi1> to vector<128x128xi32>
    %14 = arith.sitofp %13 : vector<128x128xi32> to vector<128x128xf32>
    %c0_6 = arith.constant 0 : index
    %c0_7 = arith.constant 0 : index
    %15 = vector.load %arg3[%c0_6, %c0_7] : memref<128x128xf32, #tpu.memory_space<vmem>>, vector<128x128xf32>
    tpu.vector_store %arg3[%c0_6, %c0_7], %14 {strides = array<i32>} : memref<128x128xf32, #tpu.memory_space<vmem>>, vector<128x128xf32>,
    return
  }
  func.func @transform_0(%arg0: i32) -> (i32, i32) {
    %c0_i32 = arith.constant 0 : i32
    %c0_i32_0 = arith.constant 0 : i32
    return %arg0, %c0_i32 : i32, i32
  }
  func.func @transform_1(%arg0: i32) -> (i32, i32) {
    %c0_i32 = arith.constant 0 : i32
    %c0_i32_0 = arith.constant 0 : i32
    return %arg0, %c0_i32 : i32, i32
  }
  func.func @transform_2(%arg0: i32) -> (i32, i32) {
    %c0_i32 = arith.constant 0 : i32
    %c0_i32_0 = arith.constant 0 : i32
    return %arg0, %c0_i32 : i32, i32
  }
}

</mosaic_0001>

<bundles_post_ra>
// kernel: tpu_custom_call.1
= control target key start
LH: loop header
LB: loop body
LE: loop exit
PB: predicated region body
PF: predicated region fallthrough
CT: control target
= control target key end

     0   :  { %7 = vsyncpa [#allocation3], 0  ;;  %s1114_s0 = inlined_call_operand.hbm [shape: bf16[256,128], index: 0, kind: input, shape index: {}]   ;;  %s1115_s1 = inlined_call_operand.hbm [shape: bf16[256,128], index: 1, kind: input, shape index: {}]   ;;  %s1116_s2 = inlined_call_operand.hbm [shape: f32[256,128], index: 2, kind: output, shape index: {}]  }
   0x1   :  { %9 = vsyncpa [#allocation3 + $0x1], 0 }
   0x2   :  { %10 = vsyncpa [#allocation6], 0 }
   0x3   :  { %12 = vsyncpa [#allocation6 + $0x1], 0 }
   0x4   :  { %13 = vsyncpa [#allocation4], 0 }
   0x5   :  { %15 = vsyncpa [#allocation4 + $0x1], 0  ;;  %s833_s9 = smov 0   ;;  %s835_s10 = smov 0  }
   0x6   :  { %s837_s11 = smov 0   ;;  %s839_s12 = smov 0  }
   0x7 LB: > { %s854_s13 = sadd.s32 4294967295, %s808_s12   ;;  %s507_s14 = sadd.s32 4294967294, %s808_s12   ;;  %s808_s12 = sphi %s839_s12, %s1132_s12   ;;  %s804_s11 = sphi %s837_s11, %s1131_s11   ;;  %s800_s10 = sphi %s835_s10, %s1130_s10   ;;  %s796_s9 = sphi %s833_s9, %s1129_s9  }
   0x8   : > { %s858_s15 = sadd.s32 1, %s808_s12   ;;  %s28_s16 = sadd.s32 1, %s804_s11 }
   0x9   : > { %s25_s17 = ssub.s32 %s808_s12, %s858_s15  ;;  %p35_p0 = scmp.ne.s32.totalorder %s804_s11, %s800_s10 }
   0xa   : > { %p26_p1 = scmp.eq.s32.totalorder %s25_s17, 0  ;;  %p36_p2 = scmp.eq.s32.totalorder %s808_s12, 0 }
   0xb   : > { %p41_p3 = scmp.ne.s32.totalorder %s800_s10, %s796_s9  ;;  %p42_p4 = scmp.eq.s32.totalorder %s854_s13, 0 }
   0xc   : > { %s870_s18 = scalar_select %p26_p1, %s804_s11, %s28_s16  }
   0xd   : > { %p872_p5 = por %p36_p2, %p35_p0  ;;  %p876_p6 = por %p42_p4, %p41_p3 }
   0xe   : > { %p91_p7 = scmp.eq.s32.totalorder %s854_s13, 1  ;;  %p97_p8 = scmp.eq.s32.totalorder %s507_s14, 1 }
   0xf   : > { %s1120_s20 = scalar_select %p876_p6, 1, 0 }
  0x10   : > { %p639_p10 = scmp.lt.s32.totalorder %s808_s12, 2  ;;  %p883_p11 = por %p91_p7, %p35_p0 }
  0x11   : > { %p887_p12 = por %p97_p8, %p41_p3  ;;  %s892_s23 = sand.u32 1, %s804_s11  }
  0x12   : > { %s1121_s21 = scalar_select %p883_p11, 1, 0 }
  0x13   : > { %s1122_s22 = scalar_select %p887_p12, 1, 0 }
  0x14   : > { %s541_s24 = sshll.u32 %s808_s12, 10  ;;  %s510_s25 = sshll.u32 %s892_s23, 6 }
  0x15   : > { %s901_s28 = scalar_lea.hbm %s1114_s0, %s541_s24  ;;  %s121_s29 = scalar_lea.vmem [#allocation2], %s510_s25 }
  0x16   : > { %s128_s30 = sshll.u32 %s121_s29, 4  ;;  %p907_p13 = pnand %p639_p10, %p872_p5  ;;  %s911_s30 = int_to_ptr.vmem [resolvable:$true] %s128_s30 }
  0x17   : > { %s118_s4 = scalar_lea.sflag [#allocation3], %s892_s23  ;;  %s678_s5 = scalar_lea.hbm %s901_s28, 1024 }
  0x18   : > { %p679_p0 = scmp.ne.s32.totalorder %s901_s28, %s678_s5  ;;  %p680_p1 = pneg %p907_p13 }
  0x19   : > { %s683_s8 = scalar_lea.hbm %s1114_s0, 2048  ;;  %p684_p4 = scmp.lt.u32.totalorder %s901_s28, %s1114_s0 }
  0x1a   : > { %p681_p2 = pnand %p680_p1, %p679_p0  ;;  %p685_p5 = scmp.lt.u32.totalorder %s683_s8, %s678_s5 }
  0x1b   : > { %p687_p8 = scmp.lt.u32.totalorder %s678_s5, %s901_s28 }
  0x1c   : > { %p682_p3 = pneg %p681_p2  ;;  %p686_p7 = por %p685_p5, %p684_p4 }
  0x1e   : > { %p688_p10 = por %p687_p8, %p686_p7 }
  0x20   : > { %p689_p9 = pnand %p688_p10, %p682_p3 }
  0x22   : > { %692 = shalt.err (!%p689_p9)
}
  0x23   : > { %s693_s17 = scalar_lea.vmem %s911_s30, 1024  ;;  %s810_s19 = smov [#allocation2]  }
  0x24   : > { %p694_p0 = scmp.ne.s32.totalorder %s911_s30, %s693_s17  ;;  %s698_s26 = sshll.u32 %s810_s19, 4  ;;  %s699_s26 = int_to_ptr.vmem [resolvable:$false] %s698_s26 }
  0x25   : > { %s700_s27 = scalar_lea.vmem %s699_s26, 2048  ;;  %p701_p11 = scmp.lt.s32.totalorder %s911_s30, %s699_s26 }
  0x26   : > { %p696_p2 = pnand %p694_p0, %p680_p1  ;;  %p702_p4 = scmp.lt.s32.totalorder %s700_s27, %s693_s17 }
  0x28   : > { %p697_p12 = pneg %p696_p2  ;;  %p703_p5 = por %p702_p4, %p701_p11 }
  0x2a   : > { %p704_p7 = pnand %p703_p5, %p697_p12 }
  0x2c   : > { %707 = shalt.err (!%p704_p7)
}
  0x2d   : > { %s811_s29 = smov 64   ;;  %s812_s5 = smov 4  }
  0x2e   : > { %631 = dma.hbm_to_vmem [thread:$0]  (!%p907_p13), %s901_s28, 1024, %s911_s30, %s118_s4, %s811_s29, %s811_s29, %s812_s5  }
  0x2f   : > { %p516_p9 = scmp.ge.s32.totalorder %s808_s12, 1  ;;  %p157_p11 = scmp.lt.s32.totalorder %s808_s12, 3 }
  0x30   : > { %s955_s14 = scalar_lea.hbm %s1115_s1, %s541_s24  ;;  %s142_s16 = scalar_lea.vmem [#allocation5], %s510_s25 }
  0x31   : > { %p946_p12 = pnand %p516_p9, %p157_p11  ;;  %s149_s17 = sshll.u32 %s142_s16, 4  ;;  %s959_s17 = int_to_ptr.vmem [resolvable:$true] %s149_s17 }
  0x32   : > { %s139_s28 = scalar_lea.sflag [#allocation6], %s892_s23  ;;  %s708_s30 = scalar_lea.hbm %s955_s14, 1024 }
  0x33   : > { %p709_p3 = scmp.ne.s32.totalorder %s955_s14, %s708_s30  ;;  %s713_s24 = scalar_lea.hbm %s1115_s1, 2048 }
  0x34   : > { %p714_p0 = scmp.lt.u32.totalorder %s955_s14, %s1115_s1  ;;  %p715_p2 = scmp.lt.u32.totalorder %s713_s24, %s708_s30 }
  0x35   : > { %p711_p8 = pnand %p709_p3, %p680_p1  ;;  %p717_p5 = scmp.lt.u32.totalorder %s708_s30, %s955_s14 }
  0x36   : > { %p716_p4 = por %p715_p2, %p714_p0 }
  0x37   : > { %p712_p10 = pneg %p711_p8 }
  0x38   : > { %p718_p7 = por %p717_p5, %p716_p4 }
  0x3a   : > { %p719_p9 = pnand %p718_p7, %p712_p10 }
  0x3c   : > { %722 = shalt.err (!%p719_p9)
}
  0x3d   : > { %s723_s25 = scalar_lea.vmem %s959_s17, 1024  ;;  %s813_s7 = smov [#allocation5]  }
  0x3e   : > { %p724_p11 = scmp.ne.s32.totalorder %s959_s17, %s723_s25  ;;  %s728_s8 = sshll.u32 %s813_s7, 4  ;;  %s729_s8 = int_to_ptr.vmem [resolvable:$false] %s728_s8 }
  0x3f   : > { %s730_s16 = scalar_lea.vmem %s729_s8, 2048  ;;  %p731_p6 = scmp.lt.s32.totalorder %s959_s17, %s729_s8 }
  0x40   : > { %p726_p3 = pnand %p724_p11, %p680_p1  ;;  %p732_p0 = scmp.lt.s32.totalorder %s730_s16, %s723_s25 }
  0x42   : > { %p727_p8 = pneg %p726_p3  ;;  %p733_p2 = por %p732_p0, %p731_p6 }
  0x44   : > { %p734_p4 = pnand %p733_p2, %p727_p8 }
  0x46   : > { %737 = shalt.err (!%p734_p4)
}
  0x47   : > { %634 = dma.hbm_to_vmem [thread:$0]  (!%p907_p13), %s955_s14, 1024, %s959_s17, %s139_s28, %s811_s29, %s811_s29, %s812_s5  }
  0x48   : > { %161 = sbr.rel (%p946_p12) target bundleno = 134 (0x86), region = 28  ;;  %s993_s30 = sand.u32 (!%p946_p12), 1, %s800_s10  }
  0x49   : > { %s517_s4 = sshll.u32 (!%p946_p12), %s993_s30, 6  ;;  %s164_s19 = scalar_lea.sflag (!%p946_p12), [#allocation3], %s993_s30 }
  0x4a   : > { %s997_s3 = scalar_lea.vmem (!%p946_p12), [#allocation2], %s517_s4  ;;  %p1125_p6 = scmp.ne.s32.totalorder (!%p946_p12), %s1120_s20, 0 }
  0x4f   : > { %783 = dma.done.wait (%p1125_p6), %s164_s19, 1024  }
  0x50   : > { %785 = vsyncadd (%p1125_p6), %s164_s19, 4294966272  ;;  %s173_s23 = scalar_lea.sflag [#allocation6], %s993_s30  ;;  %s1004_s29 = scalar_lea.vmem [#allocation5], %s517_s4 }
  0x51   : > { %787 = dma.done.wait (%p1125_p6), %s173_s23, 1024  }
  0x52   : > { %789 = vsyncadd (%p1125_p6), %s173_s23, 4294966272  ;;  %v545_v0 = vld [vmem:[%s997_s3] sm:$0xff]   ;;  %v608_v2 = vld [vmem:[%s997_s3 + $0x8] sm:$0xff]   ;;  %s519_s20 = sshll.u32 %s993_s30, 7  ;;  %v814_v42 = vmov 0.0   ;;  %s543_s6 = sshll.u32 %s854_s13, 11 }
  0x53   : > { %v577_v1 = vld [vmem:[%s1004_s29] sm:$0xff]   ;;  %v546_v3 = vunpack.c.l.bf16 %v545_v0  ;;  %v547_v5 = vunpack.c.h.bf16 %v545_v0  ;;  %v615_v7 = vld [vmem:[%s1004_s29 + $0x8] sm:$0xff]   ;;  %v550_v8 = vunpack.c.l.bf16 %v608_v2  ;;  %v551_v10 = vunpack.c.h.bf16 %v608_v2  ;;  %v609_v12 = vld [vmem:[%s997_s3 + $0x10] sm:$0xff]   ;;  %s1025_s5 = scalar_lea.vmem [#allocation7], %s519_s20  ;;  %s1065_s24 = scalar_lea.hbm %s1116_s2, %s543_s6 }
  0x54   : > { %v578_v4 = vunpack.c.l.bf16 %v577_v1  ;;  %v579_v6 = vunpack.c.h.bf16 %v577_v1  ;;  %v582_v9 = vunpack.c.l.bf16 %v615_v7  ;;  %v583_v11 = vunpack.c.h.bf16 %v615_v7  ;;  %v616_v13 = vld [vmem:[%s1004_s29 + $0x10] sm:$0xff]   ;;  %v610_v30 = vld [vmem:[%s997_s3 + $0x18] sm:$0xff]   ;;  %v611_v45 = vld [vmem:[%s997_s3 + $0x20] sm:$0xff]   ;;  %s411_s14 = sshll.u32 %s1025_s5, 4  ;;  %s398_s13 = scalar_lea.sflag [#allocation4], %s993_s30  ;;  %s1067_s14 = int_to_ptr.vmem [resolvable:$true] %s411_s14 }
  0x55   : > { %v269_v14 = vmul.f32 2.0, %v546_v3  ;;  %v270_v16 = vmul.f32 2.0, %v547_v5  ;;  %v271_v18 = vmul.f32 2.0, %v550_v8  ;;  %v272_v20 = vmul.f32 2.0, %v551_v10  ;;  %v617_v41 = vld [vmem:[%s1004_s29 + $0x18] sm:$0xff]   ;;  %v618_v46 = vld [vmem:[%s1004_s29 + $0x20] sm:$0xff]  }
  0x56   : > { %v301_v15 = vmul.f32 0.63095737, %v578_v4  ;;  %v302_v17 = vmul.f32 0.63095737, %v579_v6  ;;  %v303_v19 = vmul.f32 0.63095737, %v582_v9  ;;  %v554_v24 = vunpack.c.l.bf16 %v609_v12 }
  0x57   : > { %v304_v21 = vmul.f32 0.63095737, %v583_v11  ;;  %v285_v22 = vsub.f32 1.0, %v269_v14  ;;  %v286_v23 = vsub.f32 1.0, %v270_v16  ;;  %v586_v25 = vunpack.c.l.bf16 %v616_v13  ;;  %v612_v58 = vld [vmem:[%s997_s3 + $0x28] sm:$0xff]   ;;  %s738_s26 = scalar_lea.vmem %s1067_s14, 2048 }
  0x58   : > { %v287_v26 = vsub.f32 1.0, %v271_v18  ;;  %v288_v27 = vsub.f32 1.0, %v272_v20  ;;  %v555_v28 = vunpack.c.h.bf16 %v609_v12  ;;  %v587_v29 = vunpack.c.h.bf16 %v616_v13  ;;  %v619_v63 = vld [vmem:[%s1004_s29 + $0x28] sm:$0xff]   ;;  %v613_v18 = vld [vmem:[%s997_s3 + $0x30] sm:$0xff]   ;;  %p739_p13 = scmp.ne.s32.totalorder %s1067_s14, %s738_s26  ;;  %p1126_p1 = scmp.ne.s32.totalorder %s1121_s21, 0 }
  0x59   : > { %v317_v31 = vadd.f32 %v301_v15, %v285_v22  ;;  %v318_v32 = vadd.f32 %v302_v17, %v286_v23  ;;  %v273_v33 = vmul.f32 2.0, %v554_v24  ;;  %v305_v34 = vmul.f32 0.63095737, %v586_v25  ;;  %v620_v22 = vld [vmem:[%s1004_s29 + $0x30] sm:$0xff]   ;;  %s815_s27 = smov [#allocation7]  }
  0x5a   : > { %v319_v35 = vadd.f32 %v303_v19, %v287_v26  ;;  %v320_v36 = vadd.f32 %v304_v21, %v288_v27  ;;  %v274_v37 = vmul.f32 2.0, %v555_v28  ;;  %v306_v38 = vmul.f32 0.63095737, %v587_v29  ;;  %v614_v26 = vld [vmem:[%s997_s3 + $0x38] sm:$0xff]   ;;  %p740_p12 = pnand %p739_p13, %p1126_p1  ;;  %s742_s25 = sshll.u32 %s815_s27, 4  ;;  %s743_s25 = int_to_ptr.vmem [resolvable:$false] %s742_s25 }
  0x5b   : > { %vm333_vm0 = vcmp.lt.f32.partialorder %v317_v31, 0.0  ;;  %vm334_vm1 = vcmp.lt.f32.partialorder %v318_v32, 0.0  ;;  %v289_v39 = vsub.f32 1.0, %v273_v33  ;;  %v558_v40 = vunpack.c.l.bf16 %v610_v30  ;;  %s744_s7 = scalar_lea.vmem %s743_s25, 4096  ;;  %p745_p5 = scmp.lt.s32.totalorder %s1067_s14, %s743_s25 }
  0x5c   : > { %v520_v43 = vsel %vm333_vm0, 1.0, %v814_v42  ;;  %v521_v44 = vsel %vm334_vm1, 1.0, %v814_v42  ;;  %vm335_vm2 = vcmp.lt.f32.partialorder %v319_v35, 0.0  ;;  %vm336_vm3 = vcmp.lt.f32.partialorder %v320_v36, 0.0  ;;  %p741_p10 = pneg %p740_p12  ;;  %p746_p7 = scmp.lt.s32.totalorder %s744_s7, %s738_s26 }
  0x5d   : > { %381 = vst [vmem:[%s1025_s5] sm:$0xff] %v520_v43  ;;  %382 = vst [vmem:[%s1025_s5 + $0x8] sm:$0xff] %v521_v44  ;;  %v522_v47 = vsel %vm335_vm2, 1.0, %v814_v42  ;;  %v523_v48 = vsel %vm336_vm3, 1.0, %v814_v42  ;;  %v321_v49 = vadd.f32 %v305_v34, %v289_v39  ;;  %v290_v50 = vsub.f32 1.0, %v274_v37 }
  0x5e   : > { %383 = vst [vmem:[%s1025_s5 + $0x10] sm:$0xff] %v522_v47  ;;  %384 = vst [vmem:[%s1025_s5 + $0x18] sm:$0xff] %v523_v48  ;;  %v590_v51 = vunpack.c.l.bf16 %v617_v41  ;;  %v275_v52 = vmul.f32 2.0, %v558_v40  ;;  %v559_v53 = vunpack.c.h.bf16 %v610_v30  ;;  %v591_v54 = vunpack.c.h.bf16 %v617_v41  ;;  %p747_p9 = por %p746_p7, %p745_p5 }
  0x5f   : > { %vm337_vm4 = vcmp.lt.f32.partialorder %v321_v49, 0.0  ;;  %v322_v55 = vadd.f32 %v306_v38, %v290_v50  ;;  %v562_v56 = vunpack.c.l.bf16 %v611_v45  ;;  %v594_v57 = vunpack.c.l.bf16 %v618_v46  ;;  %v621_v38 = vld [vmem:[%s1004_s29 + $0x38] sm:$0xff]  }
  0x60   : > { %v524_v59 = vsel %vm337_vm4, 1.0, %v814_v42  ;;  %v291_v60 = vsub.f32 1.0, %v275_v52  ;;  %v307_v61 = vmul.f32 0.63095737, %v590_v51  ;;  %v276_v62 = vmul.f32 2.0, %v559_v53  ;;  %p748_p11 = pnand %p747_p9, %p741_p10 }
  0x61   : > { %385 = vst [vmem:[%s1025_s5 + $0x20] sm:$0xff] %v524_v59  ;;  %vm338_vm5 = vcmp.lt.f32.partialorder %v322_v55, 0.0  ;;  %v308_v0 = vmul.f32 0.63095737, %v591_v54  ;;  %v277_v1 = vmul.f32 2.0, %v562_v56  ;;  %v563_v6 = vunpack.c.h.bf16 %v611_v45 }
  0x62   : > { %v309_v2 = vmul.f32 0.63095737, %v594_v57  ;;  %v525_v3 = vsel %vm338_vm5, 1.0, %v814_v42  ;;  %v323_v4 = vadd.f32 %v307_v61, %v291_v60  ;;  %v292_v5 = vsub.f32 1.0, %v276_v62 }
  0x63   : > { %386 = vst [vmem:[%s1025_s5 + $0x28] sm:$0xff] %v525_v3  ;;  %v293_v7 = vsub.f32 1.0, %v277_v1  ;;  %v595_v8 = vunpack.c.h.bf16 %v618_v46  ;;  %v566_v9 = vunpack.c.l.bf16 %v612_v58  ;;  %v598_v10 = vunpack.c.l.bf16 %v619_v63 }
  0x64   : > { %vm339_vm6 = vcmp.lt.f32.partialorder %v323_v4, 0.0  ;;  %v324_v11 = vadd.f32 %v308_v0, %v292_v5  ;;  %v278_v12 = vmul.f32 2.0, %v563_v6  ;;  %v567_v13 = vunpack.c.h.bf16 %v612_v58 }
  0x65   : > { %v526_v14 = vsel %vm339_vm6, 1.0, %v814_v42  ;;  %v325_v15 = vadd.f32 %v309_v2, %v293_v7  ;;  %v310_v16 = vmul.f32 0.63095737, %v595_v8  ;;  %v279_v17 = vmul.f32 2.0, %v566_v9 }
  0x66   : > { %387 = vst [vmem:[%s1025_s5 + $0x30] sm:$0xff] %v526_v14  ;;  %vm340_vm7 = vcmp.lt.f32.partialorder %v324_v11, 0.0  ;;  %v294_v19 = vsub.f32 1.0, %v278_v12  ;;  %v311_v20 = vmul.f32 0.63095737, %v598_v10  ;;  %v599_v21 = vunpack.c.h.bf16 %v619_v63 }
  0x67   : > { %v527_v23 = vsel %vm340_vm7, 1.0, %v814_v42  ;;  %vm341_vm8 = vcmp.lt.f32.partialorder %v325_v15, 0.0  ;;  %v295_v24 = vsub.f32 1.0, %v279_v17  ;;  %v280_v25 = vmul.f32 2.0, %v567_v13 }
  0x68   : > { %388 = vst [vmem:[%s1025_s5 + $0x38] sm:$0xff] %v527_v23  ;;  %v528_v27 = vsel %vm341_vm8, 1.0, %v814_v42  ;;  %v326_v28 = vadd.f32 %v310_v16, %v294_v19  ;;  %v312_v29 = vmul.f32 0.63095737, %v599_v21  ;;  %v570_v30 = vunpack.c.l.bf16 %v613_v18 }
  0x69   : > { %389 = vst [vmem:[%s1025_s5 + $0x40] sm:$0xff] %v528_v27  ;;  %v327_v31 = vadd.f32 %v311_v20, %v295_v24  ;;  %v296_v32 = vsub.f32 1.0, %v280_v25  ;;  %v602_v33 = vunpack.c.l.bf16 %v620_v22  ;;  %v571_v34 = vunpack.c.h.bf16 %v613_v18 }
  0x6a   : > { %vm342_vm9 = vcmp.lt.f32.partialorder %v326_v28, 0.0  ;;  %v281_v35 = vmul.f32 2.0, %v570_v30  ;;  %v603_v36 = vunpack.c.h.bf16 %v620_v22  ;;  %v574_v37 = vunpack.c.l.bf16 %v614_v26 }
  0x6b   : > { %v529_v39 = vsel %vm342_vm9, 1.0, %v814_v42  ;;  %vm343_vm10 = vcmp.lt.f32.partialorder %v327_v31, 0.0  ;;  %v328_v40 = vadd.f32 %v312_v29, %v296_v32  ;;  %v313_v41 = vmul.f32 0.63095737, %v602_v33 }
  0x6c   : > { %390 = vst [vmem:[%s1025_s5 + $0x48] sm:$0xff] %v529_v39  ;;  %v530_v43 = vsel %vm343_vm10, 1.0, %v814_v42  ;;  %v297_v44 = vsub.f32 1.0, %v281_v35  ;;  %v282_v45 = vmul.f32 2.0, %v571_v34  ;;  %v314_v46 = vmul.f32 0.63095737, %v603_v36 }
  0x6d   : > { %391 = vst [vmem:[%s1025_s5 + $0x50] sm:$0xff] %v530_v43  ;;  %vm344_vm11 = vcmp.lt.f32.partialorder %v328_v40, 0.0  ;;  %v606_v47 = vunpack.c.l.bf16 %v621_v38  ;;  %v283_v48 = vmul.f32 2.0, %v574_v37  ;;  %v575_v49 = vunpack.c.h.bf16 %v614_v26 }
  0x6e   : > { %v531_v50 = vsel %vm344_vm11, 1.0, %v814_v42  ;;  %v329_v51 = vadd.f32 %v313_v41, %v297_v44  ;;  %v298_v52 = vsub.f32 1.0, %v282_v45  ;;  %v607_v53 = vunpack.c.h.bf16 %v621_v38 }
  0x6f   : > { %392 = vst [vmem:[%s1025_s5 + $0x58] sm:$0xff] %v531_v50  ;;  %v299_v54 = vsub.f32 1.0, %v283_v48  ;;  %v315_v55 = vmul.f32 0.63095737, %v606_v47  ;;  %v284_v56 = vmul.f32 2.0, %v575_v49 }
  0x70   : > { %vm345_vm12 = vcmp.lt.f32.partialorder %v329_v51, 0.0  ;;  %v330_v57 = vadd.f32 %v314_v46, %v298_v52  ;;  %v316_v58 = vmul.f32 0.63095737, %v607_v53 }
  0x71   : > { %v532_v59 = vsel %vm345_vm12, 1.0, %v814_v42  ;;  %v331_v60 = vadd.f32 %v315_v55, %v299_v54  ;;  %v300_v61 = vsub.f32 1.0, %v284_v56 }
  0x72   : > { %393 = vst [vmem:[%s1025_s5 + $0x60] sm:$0xff] %v532_v59  ;;  %vm346_vm13 = vcmp.lt.f32.partialorder %v330_v57, 0.0 }
  0x73   : > { %v533_v62 = vsel %vm346_vm13, 1.0, %v814_v42  ;;  %vm347_vm14 = vcmp.lt.f32.partialorder %v331_v60, 0.0  ;;  %v332_v63 = vadd.f32 %v316_v58, %v300_v61 }
  0x74   : > { %394 = vst [vmem:[%s1025_s5 + $0x68] sm:$0xff] %v533_v62  ;;  %v534_v0 = vsel %vm347_vm14, 1.0, %v814_v42 }
  0x75   : > { %395 = vst [vmem:[%s1025_s5 + $0x70] sm:$0xff] %v534_v0  ;;  %vm348_vm15 = vcmp.lt.f32.partialorder %v332_v63, 0.0 }
  0x76   : > { %v535_v1 = vsel %vm348_vm15, 1.0, %v814_v42 }
  0x77   : > { %396 = vst [vmem:[%s1025_s5 + $0x78] sm:$0xff] %v535_v1 }
  0x78   : > { %751 = shalt.err (!%p748_p11)
}
  0x79   : > { %s752_s8 = scalar_lea.hbm %s1065_s24, 2048  ;;  %s756_s19 = scalar_lea.hbm %s1116_s2, 4096 }
  0x7a   : > { %p753_p3 = scmp.ne.s32.totalorder %s1065_s24, %s752_s8  ;;  %p757_p2 = scmp.lt.u32.totalorder %s1065_s24, %s1116_s2 }
  0x7b   : > { %p758_p4 = scmp.lt.u32.totalorder %s756_s19, %s752_s8  ;;  %p760_p13 = scmp.lt.u32.totalorder %s752_s8, %s1065_s24 }
  0x7c   : > { %p754_p8 = pnand %p753_p3, %p1126_p1 }
  0x7d   : > { %p759_p6 = por %p758_p4, %p757_p2 }
  0x7e   : > { %p755_p0 = pneg %p754_p8 }
  0x7f   : > { %p761_p12 = por %p760_p13, %p759_p6 }
  0x81   : > { %p762_p10 = pnand %p761_p12, %p755_p0 }
  0x83   : > { %765 = shalt.err (!%p762_p10)
}
  0x84   : > { %s816_s29 = smov 128   ;;  %s817_s20 = smov 8  }
  0x85   : > { %626 = dma.vmem_to_hbm [thread:$0]  (%p1126_p1), %s1067_s14, 2048, %s1065_s24, %s398_s13, %s816_s29, %s816_s29, %s817_s20  }
  0x86 PF: > { %s426_s5 = sand.u32 1, %s796_s9   ;;  %p1127_p5 = scmp.ne.s32.totalorder %s1122_s22, 0 }
  0x87   : > { %p1128_p7 = scmp.ge.s32.totalorder %s808_s12, 2  ;;  %s427_s6 = scalar_lea.sflag [#allocation4], %s426_s5 }
  0x89   : > { %p636_p9 = pnand %p1128_p7, %p1127_p5 }
  0x8b   : > { %791 = dma.done.wait (!%p636_p9), %s427_s6, 2048  }
  0x8c   : > { %793 = vsyncadd (!%p636_p9), %s427_s6, 4294965248  ;;  %p18_p11 = scmp.ge.s32.totalorder %s858_s15, 4   ;;  %s1129_s9 = smov %s800_s10 }
  0x8d   : > { %s1130_s10 = smov %s804_s11  ;;  %s1131_s11 = smov %s870_s18 }
  0x8e   : > { %s1132_s12 = smov %s858_s15  ;;  %20 = sbr.rel (!%p18_p11) target bundleno = 7 (0x7), region = 86 }
  0x95   :  { %432 = vsyncpa [#allocation3], 1 }
  0x96   :  { %434 = vsyncpa [#allocation3 + $0x1], 1 }
  0x97   :  { %435 = vsyncpa [#allocation6], 1 }
  0x98   :  { %437 = vsyncpa [#allocation6 + $0x1], 1 }
  0x99   :  { %438 = vsyncpa [#allocation4], 1 }
  0x9a   :  { %440 = vsyncpa [#allocation4 + $0x1], 1 }

</bundles_post_ra>
